<compile_context>
chip_gen: v6e
topology: v6e:2x2x1
jax: 0.10.0
libtpu: 0.0.40
codegen_flags: <defaults>
</compile_context>

<pallas_src>
import functools

import jax
import jax.numpy as jnp
from jax.experimental import pallas as pl
from jax.experimental.pallas import tpu as pltpu


def _layernorm2d_kernel(x_ref, w_ref, b_ref, o_ref, *, eps: float, inv_c: float):
    # x_ref: (bn, C, T); w_ref / b_ref: (1, C, 1).
    xf = x_ref[...].astype(jnp.float32)
    u = jnp.sum(xf, axis=1, keepdims=True) * inv_c            # (bn, 1, T) mean
    d = xf - u
    var = jnp.sum(d * d, axis=1, keepdims=True) * inv_c       # two-pass variance
    inv = jax.lax.rsqrt(var + eps)                            # EUP
    w = w_ref[...].astype(jnp.float32)                        # (1, C, 1)
    b = b_ref[...].astype(jnp.float32)                        # (1, C, 1)
    o_ref[...] = (d * inv * w + b).astype(o_ref.dtype)


def _cdiv(a: int, b: int) -> int:
    return -(-a // b)


def _round_up(x: int, m: int) -> int:
    return _cdiv(x, m) * m


def _device_kind() -> str:
    try:
        return jax.devices()[0].device_kind.lower()
    except Exception:
        return ""


def _is_multi_tensorcore(kind: str) -> bool:
    # v7x has 2 TCs per chip; v4/v5p have a megacore pair.
    return any(tag in kind for tag in ("v7", "v4", "v5p"))


def _vmem_plan(kind: str):
    """(block budget bytes per grid step, vmem_limit_bytes or None)."""
    if "v2" in kind or "v3" in kind:
        return 6 << 20, None
    if "v7" in kind:
        # 64 MiB physical VMEM per TC: leave room for f32 temps + double buffers.
        return 16 << 20, 48 << 20
    if "v6" in kind or "v5e" in kind or "v5 lite" in kind or "v5lite" in kind:
        # 128 MiB physical VMEM: be generous so large-C bf16 shapes keep big tiles.
        return 32 << 20, 80 << 20
    # v4 / v5p / unknown: conservative but still well past default scoped limits.
    return 16 << 20, 48 << 20


_TARGET_BLOCK_BYTES = 1 << 20   # aim for >= ~1 MiB of input bytes per grid step
_MAX_BLOCK_BYTES = 4 << 20      # diminishing returns past a few MiB per block


def _plan_blocks(N: int, C: int, HW: int, dtype_bytes: int, budget: int):
    """Returns (bn, tile_hw, n_spatial)."""
    hw128 = _round_up(HW, 128)

    # VMEM bytes per lane-column per step: double-buffered input + output blocks
    # plus ~2 block-sized f32 temporaries created inside the kernel.
    per_col = C * (4 * dtype_bytes + 8)
    lanes_budget = max(128, (budget // per_col) // 128 * 128)        # hard limit
    lanes_bytecap = max(128, (_MAX_BLOCK_BYTES // (C * dtype_bytes)) // 128 * 128)
    min_lanes = 512 if dtype_bytes < 4 else 128                      # v5e DMA rows
    cap = max(min(lanes_bytecap, lanes_budget), min(min_lanes, lanes_budget))

    tile_hw = min(hw128, cap)
    if tile_hw >= HW:
        # One spatial block covers everything: use the exact extent (full-dim
        # blocks are always legal, no masked boundary).
        tile_hw = HW
        n_spatial = 1
    else:
        # tile_hw is a multiple of 128; last block may be partial (masked).
        n_spatial = _cdiv(HW, tile_hw)

    # If one spatial block is tiny, also span batch to amortize per-step cost.
    bn = 1
    if n_spatial == 1 and N > 1:
        blk_bytes = C * tile_hw * dtype_bytes
        if blk_bytes < _TARGET_BLOCK_BYTES:
            want = max(1, _TARGET_BLOCK_BYTES // blk_bytes)
            fit = max(1, budget // max(1, tile_hw * per_col))
            bn = int(min(N, want, fit))
    return bn, tile_hw, n_spatial


def layernorm2d(x: jax.Array, weight: jax.Array, bias: jax.Array,
                eps: float = 1e-6) -> jax.Array:
    """x: (N, C, H, W); weight/bias: (C,). Returns (N, C, H, W)."""
    N, C, H, W = x.shape
    HW = H * W
    dtype_bytes = jnp.dtype(x.dtype).itemsize

    kind = _device_kind()
    budget, vmem_limit = _vmem_plan(kind)
    bn, tile_hw, n_spatial = _plan_blocks(N, C, HW, dtype_bytes, budget)

    # Keep >= 2 grid steps on multi-TensorCore parts so both cores get work.
    if _is_multi_tensorcore(kind) and _cdiv(N, bn) * n_spatial < 2:
        if bn > 1:
            bn = max(1, _cdiv(N, 2))
        elif n_spatial == 1 and tile_hw % 256 == 0:
            tile_hw //= 2                      # stays a multiple of 128
            n_spatial = _cdiv(HW, tile_hw)

    grid = (_cdiv(N, bn), n_spatial)

    x3 = x.reshape(N, C, HW)
    w3 = weight.reshape(1, C, 1)
    b3 = bias.reshape(1, C, 1)

    cp_kwargs = dict(dimension_semantics=("parallel", "parallel"))
    if vmem_limit is not None:
        cp_kwargs["vmem_limit_bytes"] = int(vmem_limit)

    out3 = pl.pallas_call(
        functools.partial(_layernorm2d_kernel, eps=float(eps), inv_c=1.0 / C),
        out_shape=jax.ShapeDtypeStruct((N, C, HW), x.dtype),
        grid_spec=pltpu.PrefetchScalarGridSpec(
            num_scalar_prefetch=0,
            grid=grid,
            in_specs=[
                pl.BlockSpec((bn, C, tile_hw), lambda n, s: (n, 0, s)),
                pl.BlockSpec((1, C, 1), lambda n, s: (0, 0, 0)),
                pl.BlockSpec((1, C, 1), lambda n, s: (0, 0, 0)),
            ],
            out_specs=pl.BlockSpec((bn, C, tile_hw), lambda n, s: (n, 0, s)),
        ),
        compiler_params=pltpu.CompilerParams(**cp_kwargs),
    )(x3, w3, b3)

    return out3.reshape(N, C, H, W)


def _layernorm2d_ref(x, weight, bias, eps=1e-6):
    xf = x.astype(jnp.float32)
    u = jnp.mean(xf, axis=1, keepdims=True)
    s = jnp.mean((xf - u) ** 2, axis=1, keepdims=True)
    y = (xf - u) / jnp.sqrt(s + eps)
    return (weight[None, :, None, None] * y
            + bias[None, :, None, None]).astype(x.dtype)


if __name__ == "__main__":
    key = jax.random.PRNGKey(0)
    kx, kw, kb = jax.random.split(key, 3)

    N, C, H, W = 2, 4, 16, 16
    x = jax.random.normal(kx, (N, C, H, W), dtype=jnp.float32)
    # Module __init__ uses ones/zeros; use deterministic random values so the
    # affine path is actually exercised.
    weight = 1.0 + 0.1 * jax.random.normal(kw, (C,), dtype=jnp.float32)
    bias = 0.1 * jax.random.normal(kb, (C,), dtype=jnp.float32)

    out = layernorm2d(x, weight, bias)
    out = jax.block_until_ready(out)

    ref = _layernorm2d_ref(x, weight, bias)
    assert out.shape == (N, C, H, W)
    assert jnp.allclose(out, ref, atol=1e-5, rtol=1e-5), "mismatch vs reference"

    # Also exercise a non-128-divisible spatial size (partial / full-dim block path).
    H2, W2 = 14, 14
    x2 = jax.random.normal(kx, (N, C, H2, W2), dtype=jnp.float32)
    out2 = jax.block_until_ready(layernorm2d(x2, weight, bias))
    ref2 = _layernorm2d_ref(x2, weight, bias)
    assert jnp.allclose(out2, ref2, atol=1e-5, rtol=1e-5), "mismatch (ragged path)"

    print("KERNEL_OK")
</pallas_src>

<mosaic_0001>
module attributes {stable_mosaic.version = 11 : i64} {
  func.func @_layernorm2d_kernel(%arg0: i32, %arg1: i32, %arg2: memref<2x4x256xf32, #tpu.memory_space<vmem>>, %arg3: memref<1x4x1xf32, #tpu.memory_space<vmem>>, %arg4: memref<1x4x1xf32, #tpu.memory_space<vmem>>, %arg5: memref<2x4x256xf32, #tpu.memory_space<vmem>>) attributes {dimension_semantics = [#tpu.dimension_semantics<parallel>, #tpu.dimension_semantics<parallel>], iteration_bounds = array<i64: 1, 1>, scalar_prefetch = 0 : i64, scratch_operands = 0 : i64, tpu.core_type = #tpu.core_type<tc>, window_params = [{transform_indices = @transform_0, window_bounds = array<i64: 2, 4, 256>}, {pipeline_mode = #tpu.pipeline_mode<synchronous>, transform_indices = @transform_1, window_bounds = array<i64: 1, 4, 1>}, {pipeline_mode = #tpu.pipeline_mode<synchronous>, transform_indices = @transform_2, window_bounds = array<i64: 1, 4, 1>}, {transform_indices = @transform_3, window_bounds = array<i64: 2, 4, 256>}]} {
    %c0 = arith.constant 0 : index
    %c0_0 = arith.constant 0 : index
    %c0_1 = arith.constant 0 : index
    %0 = vector.load %arg2[%c0, %c0_0, %c0_1] : memref<2x4x256xf32, #tpu.memory_space<vmem>>, vector<2x4x256xf32>
    %cst = arith.constant dense<0.000000e+00> : vector<2x256xf32>
    %1 = vector.multi_reduction <add>, %0, %cst [1] : vector<2x4x256xf32> to vector<2x256xf32>
    %2 = vector.shape_cast %1 : vector<2x256xf32> to vector<2x1x256xf32>
    %cst_2 = arith.constant 2.500000e-01 : f32
    %3 = vector.broadcast %cst_2 : f32 to vector<2x1x256xf32>
    %4 = arith.mulf %2, %3 : vector<2x1x256xf32>
    %5 = vector.broadcast %4 : vector<2x1x256xf32> to vector<2x4x256xf32>
    %6 = arith.subf %0, %5 : vector<2x4x256xf32>
    %7 = arith.mulf %6, %6 : vector<2x4x256xf32>
    %cst_3 = arith.constant dense<0.000000e+00> : vector<2x256xf32>
    %8 = vector.multi_reduction <add>, %7, %cst_3 [1] : vector<2x4x256xf32> to vector<2x256xf32>
    %9 = vector.shape_cast %8 : vector<2x256xf32> to vector<2x1x256xf32>
    %cst_4 = arith.constant 2.500000e-01 : f32
    %10 = vector.broadcast %cst_4 : f32 to vector<2x1x256xf32>
    %11 = arith.mulf %9, %10 : vector<2x1x256xf32>
    %cst_5 = arith.constant 9.99999997E-7 : f32
    %12 = vector.broadcast %cst_5 : f32 to vector<2x1x256xf32>
    %13 = arith.addf %11, %12 : vector<2x1x256xf32>
    %14 = math.rsqrt %13 : vector<2x1x256xf32>
    %c0_6 = arith.constant 0 : index
    %c0_7 = arith.constant 0 : index
    %c0_8 = arith.constant 0 : index
    %15 = vector.load %arg3[%c0_6, %c0_7, %c0_8] : memref<1x4x1xf32, #tpu.memory_space<vmem>>, vector<1x4x1xf32>
    %c0_9 = arith.constant 0 : index
    %c0_10 = arith.constant 0 : index
    %c0_11 = arith.constant 0 : index
    %16 = vector.load %arg4[%c0_9, %c0_10, %c0_11] : memref<1x4x1xf32, #tpu.memory_space<vmem>>, vector<1x4x1xf32>
    %17 = vector.broadcast %14 : vector<2x1x256xf32> to vector<2x4x256xf32>
    %18 = arith.mulf %6, %17 : vector<2x4x256xf32>
    %19 = vector.broadcast %15 : vector<1x4x1xf32> to vector<2x4x256xf32>
    %20 = arith.mulf %18, %19 : vector<2x4x256xf32>
    %21 = vector.broadcast %16 : vector<1x4x1xf32> to vector<2x4x256xf32>
    %22 = arith.addf %20, %21 : vector<2x4x256xf32>
    %c0_12 = arith.constant 0 : index
    %c0_13 = arith.constant 0 : index
    %c0_14 = arith.constant 0 : index
    %23 = vector.load %arg5[%c0_12, %c0_13, %c0_14] : memref<2x4x256xf32, #tpu.memory_space<vmem>>, vector<2x4x256xf32>
    tpu.vector_store %arg5[%c0_12, %c0_13, %c0_14], %22 {strides = array<i32>} : memref<2x4x256xf32, #tpu.memory_space<vmem>>, vector<2x4x256xf32>,
    return
  }
  func.func @transform_0(%arg0: i32, %arg1: i32) -> (i32, i32, i32) {
    %c0_i32 = arith.constant 0 : i32
    %c0_i32_0 = arith.constant 0 : i32
    return %arg0, %c0_i32, %arg1 : i32, i32, i32
  }
  func.func @transform_1(%arg0: i32, %arg1: i32) -> (i32, i32, i32) {
    %c0_i32 = arith.constant 0 : i32
    %c0_i32_0 = arith.constant 0 : i32
    %c0_i32_1 = arith.constant 0 : i32
    %c0_i32_2 = arith.constant 0 : i32
    return %c0_i32, %c0_i32_0, %c0_i32_1 : i32, i32, i32
  }
  func.func @transform_2(%arg0: i32, %arg1: i32) -> (i32, i32, i32) {
    %c0_i32 = arith.constant 0 : i32
    %c0_i32_0 = arith.constant 0 : i32
    %c0_i32_1 = arith.constant 0 : i32
    %c0_i32_2 = arith.constant 0 : i32
    return %c0_i32, %c0_i32_0, %c0_i32_1 : i32, i32, i32
  }
  func.func @transform_3(%arg0: i32, %arg1: i32) -> (i32, i32, i32) {
    %c0_i32 = arith.constant 0 : i32
    %c0_i32_0 = arith.constant 0 : i32
    return %arg0, %c0_i32, %arg1 : i32, i32, i32
  }
}

</mosaic_0001>

<bundles_post_ra>
// kernel: tpu_custom_call.1
= control target key start
LH: loop header
LB: loop body
LE: loop exit
PB: predicated region body
PF: predicated region fallthrough
CT: control target
= control target key end

     0   :  { %8 = vsyncpa [#allocation3], 0  ;;  %s300_s0 = inlined_call_operand.hbm [shape: f32[2,4,256], index: 0, kind: input, shape index: {}]   ;;  %s301_s1 = inlined_call_operand.vmem [shape: f32[1,4,1], index: 1, kind: input, shape index: {}]   ;;  %s302_s2 = inlined_call_operand.vmem [shape: f32[1,4,1], index: 2, kind: input, shape index: {}]   ;;  %s303_s3 = inlined_call_operand.hbm [shape: f32[2,4,256], index: 3, kind: output, shape index: {}]  }
   0x1   :  { %9 = vsyncpa [#allocation4], 0  ;;  %s248_s12 = smov [#allocation2]  }
   0x2   :  { %s15_s13 = sshll.u32 %s248_s12, 4  ;;  %s16_s13 = int_to_ptr.vmem [resolvable:$true] %s15_s13 }
   0x3   :  { %s212_s14 = scalar_lea.vmem %s16_s13, 256  ;;  %p217_p1 = scmp.lt.s32.totalorder %s16_s13, %s16_s13 }
   0x4   :  { %p213_p0 = scmp.ne.s32.totalorder %s16_s13, %s212_s14  ;;  %p218_p2 = scmp.lt.s32.totalorder %s212_s14, %s212_s14 }
   0x6   :  { %p219_p3 = por %p218_p2, %p217_p1 }
   0x8   :  { %p220_p4 = pnand %p219_p3, %p213_p0 }
   0xa   :  { %223 = shalt.err (!%p220_p4)
}
   0xb   :  { %s249_s15 = smov 128   ;;  %s250_s16 = smov 8  }
   0xc   :  { %21 = dma.hbm_to_vmem [thread:$0]  %s300_s0, 256, %s16_s13, [#allocation3], %s249_s15, %s249_s15, %s250_s16  }
   0xd   :  { %244 = dma.done.wait [#allocation3], 256  }
   0xe   :  { %245 = vsyncadd [#allocation3], 4294967040  ;;  %v251_v0 = vmov 0   ;;  %v128_v1 = vld [vmem:[%s301_s1] sm:$0xf]  ;;  %v30_v4 = vld [vmem:[#allocation2 + $0x8] sm:$0xff] }
   0xf   :  { %193 = vset.pattern.permute.xlu0 %v251_v0  ;;  %v129_v2 = vld [vmem:[%s302_s2] sm:$0xf]  ;;  %vm37_vm0 = vcmask 1043456   ;;  %v34_v6 = vcombine.high %v30_v4, %v30_v4  ;;  %s253_s0 = smov [#allocation5]  }
  0x10   :  { %142 = vperm.xlu0 %193, %v128_v1   ;;  %v29_v3 = vld [vmem:[#allocation2] sm:$0xff]  ;;  %v52_v9 = vsel %vm37_vm0, %v30_v4, 0.0  ;;  %s175_s1 = sshll.u32 %s253_s0, 4  ;;  %s176_s1 = int_to_ptr.vmem [resolvable:$true] %s175_s1 }
  0x11   :  { %v33_v5 = vcombine.high %v29_v3, %v29_v3  ;;  %v38_v7 = vsel %vm37_vm0, %v29_v3, 0.0  ;;  %v59_v10 = vsel %vm37_vm0, %v34_v6, 0.0  ;;  %v53_v13 = vrot.slane %v52_v9, 4  ;;  %s224_s2 = scalar_lea.vmem %s176_s1, 256  ;;  %p229_p6 = scmp.lt.s32.totalorder %s176_s1, %s176_s1 }
  0x12   :  { %v39_v11 = vrot.slane %v38_v7, 4  ;;  %v60_v14 = vrot.slane %v59_v10, 4  ;;  %p225_p5 = scmp.ne.s32.totalorder %s176_s1, %s224_s2  ;;  %p230_p7 = scmp.lt.s32.totalorder %s224_s2, %s224_s2 }
  0x13   :  { %v45_v8 = vsel %vm37_vm0, %v33_v5, 0.0  ;;  %v54_v17 = vadd.f32 %v53_v13, %v52_v9 }
  0x14   :  { %156 = vperm.xlu0 %193, %v129_v2   ;;  %v46_v12 = vrot.slane %v45_v8, 4  ;;  %v40_v15 = vadd.f32 %v39_v11, %v38_v7  ;;  %v61_v18 = vadd.f32 %v60_v14, %v59_v10  ;;  %p231_p8 = por %p230_p7, %p229_p6 }
  0x15   :  { %v55_v21 = vrot.slane %v54_v17, 2 }
  0x16   :  { %v47_v16 = vadd.f32 %v46_v12, %v45_v8  ;;  %v41_v19 = vrot.slane %v40_v15, 2  ;;  %v62_v22 = vrot.slane %v61_v18, 2  ;;  %p232_p9 = pnand %p231_p8, %p225_p5 }
  0x17   :  { %v56_v25 = vadd.f32 %v55_v21, %v54_v17  ;;  %v147_v21 = vlaneseq }
  0x18   :  { %v48_v20 = vrot.slane %v47_v16, 2  ;;  %v42_v23 = vadd.f32 %v41_v19, %v40_v15  ;;  %v63_v26 = vadd.f32 %v62_v22, %v61_v18  ;;  %v252_v19 = vmov 839922192  }
  0x19   :  { %v57_v29 = vrot.slane %v56_v25, 1 }
  0x1a   :  { %v49_v24 = vadd.f32 %v48_v20, %v47_v16  ;;  %v43_v27 = vrot.slane %v42_v23, 1  ;;  %v64_v30 = vrot.slane %v63_v26, 1  ;;  %v145_v20 = vunpack.c.l.s4 %v252_v19 }
  0x1b   :  { %v58_v33 = vadd.f32 %v57_v29, %v56_v25 }
  0x1c   :  { %v50_v28 = vrot.slane %v49_v24, 1  ;;  %v44_v31 = vadd.f32 %v43_v27, %v42_v23  ;;  %v65_v34 = vadd.f32 %v64_v30, %v63_v26  ;;  %v146_v25 = vunpack.c.0.s8 %v145_v20 }
  0x1d   :  { %v68_v37 = vmul.f32 0.25, %v58_v33  ;;  %v148_v26 = vshrl.u32 %v147_v21, 7 }
  0x1e   :  { %v51_v32 = vadd.f32 %v50_v28, %v49_v24  ;;  %v66_v35 = vmul.f32 0.25, %v44_v31  ;;  %v69_v38 = vmul.f32 0.25, %v65_v34 }
  0x1f   :  { %v149_v28 = vsub.s32 %v146_v25, %v148_v26 }
  0x20   :  { %v67_v36 = vmul.f32 0.25, %v51_v32  ;;  %v75_v40 = vcombine.low %v68_v37, %v69_v38 }
  0x22   :  { %v74_v39 = vcombine.low %v66_v35, %v67_v36  ;;  %v79_v42 = vsub.f32 %v30_v4, %v75_v40 }
  0x24   :  { %v78_v41 = vsub.f32 %v29_v3, %v74_v39  ;;  %v81_v44 = vmul.f32 %v79_v42, %v79_v42 }
  0x26   :  { %v80_v43 = vmul.f32 %v78_v41, %v78_v41  ;;  %v85_v46 = vcombine.high %v81_v44, %v81_v44  ;;  %v102_v48 = vsel %vm37_vm0, %v81_v44, 0.0 }
  0x27   :  { %v103_v52 = vrot.slane %v102_v48, 4 }
  0x28   :  { %v84_v45 = vcombine.high %v80_v43, %v80_v43  ;;  %v88_v47 = vsel %vm37_vm0, %v80_v43, 0.0  ;;  %v109_v51 = vsel %vm37_vm0, %v85_v46, 0.0 }
  0x29   :  { %v89_v50 = vrot.slane %v88_v47, 4  ;;  %v110_v54 = vrot.slane %v109_v51, 4  ;;  %v104_v56 = vadd.f32 %v103_v52, %v102_v48 }
  0x2a   :  { %v95_v49 = vsel %vm37_vm0, %v84_v45, 0.0 }
  0x2b   :  { %v96_v53 = vrot.slane %v95_v49, 4  ;;  %v90_v55 = vadd.f32 %v89_v50, %v88_v47  ;;  %v111_v58 = vadd.f32 %v110_v54, %v109_v51  ;;  %v105_v60 = vrot.slane %v104_v56, 2 }
  0x2d   :  { %v97_v57 = vadd.f32 %v96_v53, %v95_v49  ;;  %v91_v59 = vrot.slane %v90_v55, 2  ;;  %v112_v62 = vrot.slane %v111_v58, 2  ;;  %v106_v0 = vadd.f32 %v105_v60, %v104_v56 }
  0x2f   :  { %v98_v61 = vrot.slane %v97_v57, 2  ;;  %v92_v63 = vadd.f32 %v91_v59, %v90_v55  ;;  %v113_v2 = vadd.f32 %v112_v62, %v111_v58  ;;  %v107_v4 = vrot.slane %v106_v0, 1 }
  0x31   :  { %v99_v1 = vadd.f32 %v98_v61, %v97_v57  ;;  %v93_v3 = vrot.slane %v92_v63, 1  ;;  %v114_v6 = vrot.slane %v113_v2, 1  ;;  %v108_v8 = vadd.f32 %v107_v4, %v106_v0 }
  0x33   :  { %v100_v5 = vrot.slane %v99_v1, 1  ;;  %v94_v7 = vadd.f32 %v93_v3, %v92_v63  ;;  %v115_v10 = vadd.f32 %v114_v6, %v113_v2  ;;  %v118_v12 = vmul.f32 0.25, %v108_v8 }
  0x35   :  { %v101_v9 = vadd.f32 %v100_v5, %v99_v1  ;;  %v116_v11 = vmul.f32 0.25, %v94_v7  ;;  %v119_v14 = vmul.f32 0.25, %v115_v10  ;;  %v122_v16 = vadd.f32 1e-06, %v118_v12 }
  0x37   :  { %v117_v13 = vmul.f32 0.25, %v101_v9  ;;  %v120_v15 = vadd.f32 1e-06, %v116_v11  ;;  %v123_v18 = vadd.f32 1e-06, %v119_v14 }
  0x39   :  { %v121_v17 = vadd.f32 1e-06, %v117_v13  ;;  %196 = vrsqrt.f32 %v120_v15 }
  0x3a   :  { %198 = vrsqrt.f32 %v122_v16 }
  0x3b   :  { %200 = vrsqrt.f32 %v121_v17 }
  0x3c   :  { %202 = vrsqrt.f32 %v123_v18 }
  0x46   :  { %v197_v22 = vpop.eup %196 }
  0x47   :  { %v199_v23 = vpop.eup %198 }
  0x48   :  { %v201_v24 = vpop.eup %200 }
  0x49   :  { %v203_v27 = vpop.eup %202  ;;  %v134_v29 = vcombine.low %v197_v22, %v201_v24 }
  0x4a   :  { %v135_v30 = vcombine.low %v199_v23, %v203_v27 }
  0x4b   :  { %v138_v32 = vmul.f32 %v134_v29, %v78_v41 }
  0x4c   :  { %v139_v33 = vmul.f32 %v135_v30, %v79_v42 }
  0x8b   :  { %v143_v31 = vpop.permute.xlu0 %142 }
  0x8c   :  { %v150_v34 = vrot.slane %v143_v31, %v149_v28 }
  0x8e   :  { %v152_v36 = vmul.f32 %v150_v34, %v138_v32  ;;  %v153_v37 = vmul.f32 %v150_v34, %v139_v33 }
  0x8f   :  { %v157_v35 = vpop.permute.xlu0 %156 }
  0x90   :  { %v164_v38 = vrot.slane %v157_v35, %v149_v28 }
  0x92   :  { %v166_v39 = vadd.f32 %v164_v38, %v152_v36  ;;  %v167_v40 = vadd.f32 %v164_v38, %v153_v37 }
  0x94   :  { %168 = vst [vmem:[#allocation5] sm:$0xff] %v166_v39  ;;  %169 = vst [vmem:[#allocation5 + $0x8] sm:$0xff] %v167_v40 }
  0x95   :  { %235 = shalt.err (!%p232_p9)
}
  0x96   :  { %181 = dma.vmem_to_hbm [thread:$0]  %s176_s1, 256, %s303_s3, [#allocation4], %s249_s15, %s249_s15, %s250_s16  }
  0x97   :  { %246 = dma.done.wait [#allocation4], 256  }
  0x98   :  { %247 = vsyncadd [#allocation4], 4294967040 }
  0x99   :  { %185 = vsyncpa [#allocation3], 1 }
  0x9a   :  { %186 = vsyncpa [#allocation4], 1 }

</bundles_post_ra>
